<compile_context>
chip_gen: v7x
topology: tpu7x:2x2x1
jax: 0.10.0
libtpu: 0.0.40
codegen_flags: <defaults>
</compile_context>

<pallas_src>
import functools

import jax
import jax.numpy as jnp
from jax import lax
from jax.experimental import pallas as pl
from jax.experimental.pallas import tpu as pltpu

_LANE = 128


def _round_up(a, m):
    return (a + m - 1) // m * m


def _cdiv(a, b):
    return (a + b - 1) // b


def _head_kernel(x_ref, w_ref, b_ref, o_ref, *scratch,
                 tk, in_f, nk, x_resident, ragged, acc_in_out):
    """One (n, k) grid step of  out = x @ weight.T + bias.

    x_ref: (B, tk) streamed tile, or (B, k_pad) resident block (sliced here)
    w_ref: (tn, tk) weight tile in PyTorch (out-major, contraction-last) layout
    b_ref: (1, tn)  bias tile
    o_ref: (B, tn)  output block, resident across the K (reduction) grid axis
    scratch: optional (B, tn) f32 accumulator (non-f32 outputs with nk > 1)
    """
    k = pl.program_id(1)

    if x_resident:
        start = pl.multiple_of(k * tk, _LANE)
        x = x_ref[:, pl.ds(start, tk)]
    else:
        x = x_ref[...]
    w = w_ref[...]

    if ragged:
        # Last K tile extends past in_f: zero both operands' invalid columns so
        # any out-of-bounds garbage contributes exactly 0 to the dot product.
        col = k * tk + lax.broadcasted_iota(jnp.int32, (1, tk), 1)
        valid = col < in_f
        x = jnp.where(valid, x, jnp.zeros_like(x))
        w = jnp.where(valid, w, jnp.zeros_like(w))

    # Weight stays in PyTorch layout; contract the last dim of both operands.
    # (Verified design goal: no wrapper-side weight.T / weight copy in HBM.)
    partial = lax.dot_general(
        x, w,
        dimension_numbers=(((1,), (1,)), ((), ())),
        preferred_element_type=jnp.float32,
    )

    if nk == 1:
        # Single K block: write once, no reduction loop.
        o_ref[...] = (partial + b_ref[...]).astype(o_ref.dtype)
    elif acc_in_out:
        # f32 output: accumulate directly into the resident output block.
        @pl.when(k == 0)
        def _():
            o_ref[...] = partial + b_ref[...]

        @pl.when(k != 0)
        def _():
            o_ref[...] = o_ref[...] + partial
    else:
        acc_ref = scratch[0]

        @pl.when(k == 0)
        def _():
            acc_ref[...] = partial + b_ref[...]

        @pl.when(k != 0)
        def _():
            acc_ref[...] = acc_ref[...] + partial

        @pl.when(k == nk - 1)
        def _():
            o_ref[...] = acc_ref[...].astype(o_ref.dtype)


def _vmem_limit_bytes():
    """Generation-aware scoped-VMEM limit (headroom below physical capacity)."""
    cap = 64 << 20  # conservative default: v7x per-core physical VMEM
    try:
        info = pltpu.get_tpu_info()
        cap = int(getattr(info, "vmem_capacity_bytes", cap) or cap)
    except Exception:
        pass
    return max(32 << 20, min(cap - (8 << 20), int(cap * 0.9)))


def _pick_tn(out_f):
    """Output tile: prefer >=2 lane-aligned tiles so the 'parallel' N axis can
    shard across v7x's two TensorCores; otherwise one full block."""
    if out_f % _LANE == 0 and out_f >= 2 * _LANE:
        if out_f % 256 == 0 and out_f // 256 >= 2:
            return 256
        return _LANE
    return out_f


def _pick_k_tiling(B, in_f, tn, itemsize, out_itemsize, budget):
    """Returns (tk, nk, x_resident, ragged, k_pad).  Budget charges the actual
    (tn, tk) weight tile (double-buffered), x, bias, output and f32 scratch."""
    fixed = (2 * tn * 4                    # bias tiles (f32 upper bound)
             + 2 * B * tn * out_itemsize   # output block, double-buffered
             + B * tn * 4)                 # f32 scratch accumulator (worst case)

    # 1) Whole K as a single block: no reduction loop, no masking, no padding.
    single = fixed + 2 * itemsize * (B * in_f + tn * in_f)
    if single <= budget:
        return in_f, 1, False, False, in_f

    denom = 2 * itemsize * (B + tn)
    k_cap = _round_up(in_f, _LANE)

    # 2) K tiled, x resident in VMEM across the whole reduction (DMA'd once).
    #    Conservatively charge B * (in_f + tk) for the (padded) resident x.
    avail = budget - fixed - 2 * itemsize * B * in_f
    tk = (avail // denom) // _LANE * _LANE if avail > 0 else 0
    if tk >= _LANE:
        tk = min(tk, k_cap)
        nk = _cdiv(in_f, tk)
        k_pad = nk * tk
        return tk, nk, True, (in_f % tk != 0), k_pad

    # 3) K tiled, x streamed per (n, k) step (x too big to keep resident).
    avail = budget - fixed
    tk = max(_LANE, min((avail // denom) // _LANE * _LANE, k_cap))
    nk = _cdiv(in_f, tk)
    return tk, nk, False, (in_f % tk != 0), in_f


def head_forward(x, weight, bias, *, dropout=False, tiling_budget_bytes=None):
    """Forward pass of Head (Flatten -> [Dropout] -> Linear), inference mode.

    x:      (B, ...)       feature map, flattened row-major like nn.Flatten
    weight: (out_f, in_f)  PyTorch nn.Linear layout -- used as-is (no transpose)
    bias:   (out_f,)
    dropout: module flag; nn.Dropout is the identity in eval/inference mode.
    """
    B = int(x.shape[0])
    in_f = 1
    for d in x.shape[1:]:
        in_f *= int(d)
    out_f = int(weight.shape[0])
    assert weight.shape[1] == in_f
    # dropout==True is a no-op at inference.
    # TODO(synk): training-mode stochastic dropout (pltpu.prng_random_bits) is
    # intentionally not implemented -- the source module is inference-only here.

    x2 = x.reshape(B, in_f)          # nn.Flatten: row-major, like PyTorch
    b2 = bias.reshape(1, out_f)

    out_dtype = x.dtype
    itemsize = max(jnp.dtype(x.dtype).itemsize, jnp.dtype(weight.dtype).itemsize)
    out_itemsize = jnp.dtype(out_dtype).itemsize

    vmem_limit = _vmem_limit_bytes()
    budget = (int(vmem_limit * 0.8) if tiling_budget_bytes is None
              else int(tiling_budget_bytes))

    tn = _pick_tn(out_f)
    assert out_f % tn == 0, "tn must divide out_f"
    tk, nk, x_resident, ragged, k_pad = _pick_k_tiling(
        B, in_f, tn, itemsize, out_itemsize, budget)

    if x_resident and k_pad != in_f:
        # Only x (B rows, tiny) is ever padded; the weight is never copied.
        x2 = jnp.pad(x2, ((0, 0), (0, k_pad - in_f)))

    if x_resident:
        x_spec = pl.BlockSpec((B, k_pad), lambda n, k: (0, 0))  # fetched once
    else:
        x_spec = pl.BlockSpec((B, tk), lambda n, k: (0, k))

    acc_in_out = jnp.dtype(out_dtype) == jnp.dtype(jnp.float32)
    scratch = [] if (nk == 1 or acc_in_out) else [pltpu.VMEM((B, tn), jnp.float32)]

    kernel = functools.partial(
        _head_kernel, tk=tk, in_f=in_f, nk=nk,
        x_resident=x_resident, ragged=ragged, acc_in_out=acc_in_out)

    cost = pl.CostEstimate(
        flops=2 * B * in_f * out_f,
        transcendentals=0,
        bytes_accessed=(B * in_f + out_f * in_f) * itemsize
        + out_f * jnp.dtype(bias.dtype).itemsize
        + B * out_f * out_itemsize,
    )

    return pl.pallas_call(
        kernel,
        out_shape=jax.ShapeDtypeStruct((B, out_f), out_dtype),
        grid_spec=pltpu.PrefetchScalarGridSpec(
            num_scalar_prefetch=0,
            grid=(out_f // tn, nk),   # N (parallel) first, K (reduction) last
            in_specs=[
                x_spec,                                        # activations
                pl.BlockSpec((tn, tk), lambda n, k: (n, k)),   # weight tile (PyTorch layout)
                pl.BlockSpec((1, tn), lambda n, k: (0, n)),    # bias tile
            ],
            out_specs=pl.BlockSpec((B, tn), lambda n, k: (0, n)),
            scratch_shapes=scratch,
        ),
        compiler_params=pltpu.CompilerParams(
            dimension_semantics=("parallel", "arbitrary"),
            vmem_limit_bytes=vmem_limit,
        ),
        cost_estimate=cost,
    )(x2, weight, b2)


if __name__ == "__main__":
    key = jax.random.PRNGKey(0)
    kx, kw, kb, kw2, kb2 = jax.random.split(key, 5)

    # Shapes implied by the module: flatten a small (B, C, H, W) feature map.
    B, C, H, W = 2, 4, 16, 16
    in_f = C * H * W          # 1024
    out_f = 32

    x = jax.random.normal(kx, (B, C, H, W), dtype=jnp.float32)
    bound = 1.0 / (in_f ** 0.5)
    weight = jax.random.uniform(kw, (out_f, in_f), jnp.float32, -bound, bound)
    bias = jax.random.uniform(kb, (out_f,), jnp.float32, -bound, bound)

    fwd = jax.jit(functools.partial(head_forward, dropout=True))
    out = fwd(x, weight, bias)
    jax.block_until_ready(out)

    ref = jnp.dot(x.reshape(B, in_f), weight.T,
                  precision=lax.Precision.HIGHEST) + bias
    assert out.shape == (B, out_f)
    assert jnp.allclose(out, ref, atol=1e-4, rtol=1e-4)

    # Secondary check: wide, lane-aligned head (N axis split for v7x megacore)
    # with a deliberately tiny tiling budget to exercise the tiled-K path
    # (resident x, masked ragged last K tile, in-place f32 accumulation).
    in_f2, out_f2 = 1000, 256
    x_b = jax.random.normal(kx, (B, 10, 10, 10), dtype=jnp.float32)
    w_b = jax.random.uniform(kw2, (out_f2, in_f2), jnp.float32, -bound, bound)
    b_b = jax.random.uniform(kb2, (out_f2,), jnp.float32, -bound, bound)
    out_b = head_forward(x_b, w_b, b_b, dropout=False,
                         tiling_budget_bytes=600_000)
    jax.block_until_ready(out_b)
    ref_b = jnp.dot(x_b.reshape(B, in_f2), w_b.T,
                    precision=lax.Precision.HIGHEST) + b_b
    assert jnp.allclose(out_b, ref_b, atol=1e-4, rtol=1e-4)

    print("KERNEL_OK")
</pallas_src>

<mosaic_0001>
module attributes {stable_mosaic.version = 11 : i64} {
  func.func @_head_kernel(%arg0: i32, %arg1: i32, %arg2: memref<2x1024xf32, #tpu.memory_space<vmem>>, %arg3: memref<32x1024xf32, #tpu.memory_space<vmem>>, %arg4: memref<1x32xf32, #tpu.memory_space<vmem>>, %arg5: memref<2x32xf32, #tpu.memory_space<vmem>>) attributes {dimension_semantics = [#tpu.dimension_semantics<parallel>, #tpu.dimension_semantics<arbitrary>], iteration_bounds = array<i64: 1, 1>, scalar_prefetch = 0 : i64, scratch_operands = 0 : i64, tpu.core_type = #tpu.core_type<tc>, window_params = [{transform_indices = @transform_0, window_bounds = array<i64: 2, 1024>}, {transform_indices = @transform_1, window_bounds = array<i64: 32, 1024>}, {transform_indices = @transform_2, window_bounds = array<i64: 1, 32>}, {transform_indices = @transform_3, window_bounds = array<i64: 2, 32>}]} {
    %c0 = arith.constant 0 : index
    %c0_0 = arith.constant 0 : index
    %0 = vector.load %arg2[%c0, %c0_0] : memref<2x1024xf32, #tpu.memory_space<vmem>>, vector<2x1024xf32>
    %c0_1 = arith.constant 0 : index
    %c0_2 = arith.constant 0 : index
    %1 = vector.load %arg3[%c0_1, %c0_2] : memref<32x1024xf32, #tpu.memory_space<vmem>>, vector<32x1024xf32>
    %cst = arith.constant dense<0.000000e+00> : vector<2x32xf32>
    %2 = tpu.matmul %0, %1, %cst {dimension_numbers = #tpu.dot_dimension_numbers<[1], [1], [0], [0], [0, 0, 1, 0], [], []>} : vector<2x1024xf32>, vector<32x1024xf32>, vector<2x32xf32> -> vector<2x32xf32>
    %c0_3 = arith.constant 0 : index
    %c0_4 = arith.constant 0 : index
    %3 = vector.load %arg4[%c0_3, %c0_4] : memref<1x32xf32, #tpu.memory_space<vmem>>, vector<1x32xf32>
    %4 = vector.broadcast %3 : vector<1x32xf32> to vector<2x32xf32>
    %5 = arith.addf %2, %4 : vector<2x32xf32>
    %c0_5 = arith.constant 0 : index
    %c0_6 = arith.constant 0 : index
    %6 = vector.load %arg5[%c0_5, %c0_6] : memref<2x32xf32, #tpu.memory_space<vmem>>, vector<2x32xf32>
    tpu.vector_store %arg5[%c0_5, %c0_6], %5 {strides = array<i32>} : memref<2x32xf32, #tpu.memory_space<vmem>>, vector<2x32xf32>,
    return
  }
  func.func @transform_0(%arg0: i32, %arg1: i32) -> (i32, i32) {
    %c0_i32 = arith.constant 0 : i32
    %c0_i32_0 = arith.constant 0 : i32
    return %c0_i32, %arg1 : i32, i32
  }
  func.func @transform_1(%arg0: i32, %arg1: i32) -> (i32, i32) {
    %c0_i32 = arith.constant 0 : i32
    return %arg0, %arg1 : i32, i32
  }
  func.func @transform_2(%arg0: i32, %arg1: i32) -> (i32, i32) {
    %c0_i32 = arith.constant 0 : i32
    %c0_i32_0 = arith.constant 0 : i32
    return %c0_i32, %arg0 : i32, i32
  }
  func.func @transform_3(%arg0: i32, %arg1: i32) -> (i32, i32) {
    %c0_i32 = arith.constant 0 : i32
    %c0_i32_0 = arith.constant 0 : i32
    return %c0_i32, %arg0 : i32, i32
  }
}

</mosaic_0001>

<bundles_post_ra>
// kernel: head_forward.1
= control target key start
LH: loop header
LB: loop body
LE: loop exit
PB: predicated region body
PF: predicated region fallthrough
CT: control target
= control target key end

     0   :  { %8 = vsyncpa [#allocation3], 0  ;;  %s563_s0 = inlined_call_operand.vmem [shape: f32[2,1024], index: 0, kind: input, shape index: {}]   ;;  %s564_s1 = inlined_call_operand.hbm [shape: f32[32,1024], index: 1, kind: input, shape index: {}]   ;;  %s565_s2 = inlined_call_operand.vmem [shape: f32[1,32], index: 2, kind: input, shape index: {}]   ;;  %s566_s3 = inlined_call_operand.hbm [shape: f32[2,32], index: 3, kind: output, shape index: {}]  }
   0x1   :  { %9 = vsyncpa [#allocation4], 0  ;;  %s505_s12 = smov [#allocation2]   ;;  %s457_s16 = scalar_lea.hbm %s564_s1, 4096 }
   0x2   :  { %s17_s13 = sshll.u32 %s505_s12, 4  ;;  %p458_p0 = scmp.ne.s32.totalorder %s564_s1, %s457_s16  ;;  %s18_s13 = int_to_ptr.vmem [resolvable:$true] %s17_s13 }
   0x3   :  { %p461_p1 = scmp.lt.u32.totalorder %s457_s16, %s564_s1 }
   0x5   :  { %p463_p2 = pnand %p461_p1, %p458_p0 }
   0x7   :  { %466 = shalt.err (!%p463_p2)
}
   0x8   :  { %s467_s21 = scalar_lea.vmem %s18_s13, 4096  ;;  %p472_p4 = scmp.lt.s32.totalorder %s18_s13, %s18_s13 }
   0x9   :  { %p468_p3 = scmp.ne.s32.totalorder %s18_s13, %s467_s21  ;;  %p473_p5 = scmp.lt.s32.totalorder %s467_s21, %s467_s21 }
   0xb   :  { %p474_p6 = por %p473_p5, %p472_p4 }
   0xd   :  { %p475_p7 = pnand %p474_p6, %p468_p3 }
   0xf   :  { %478 = shalt.err (!%p475_p7)
}
  0x10   :  { %s506_s22 = smov 1024   ;;  %s507_s23 = smov 64  }
  0x11   :  { %23 = dma.hbm_to_vmem [thread:$0]  %s564_s1, 4096, %s18_s13, [#allocation3], %s506_s22, %s506_s22, %s507_s23  }
  0x12   :  { %501 = dma.done.wait [#allocation3], 4096  }
  0x13   :  { %502 = vsyncadd [#allocation3], 4294963200  ;;  %v508_v0 = vmov 1983009808   ;;  %v76_v2 = vlaneseq  ;;  %v32_v5 = vld [vmem:[#allocation2 + $0x8] sm:$0xff]  ;;  %v31_v10 = vld [vmem:[#allocation2] sm:$0xff] }
  0x14   :  { %v74_v1 = vunpack.c.l.s4 %v508_v0  ;;  %v40_v6 = vld [vmem:[#allocation2 + $0x48] sm:$0xff]  ;;  %v39_v11 = vld [vmem:[#allocation2 + $0x40] sm:$0xff]  ;;  %v34_v30 = vld [vmem:[#allocation2 + $0x18] sm:$0xff]  ;;  %s509_s30 = smov [#allocation5]   ;;  %vm394_vm0 = vcmask 254976  }
  0x15   :  { %v77_v4 = vshrl.u32 %v76_v2, 7  ;;  %v36_v7 = vld [vmem:[#allocation2 + $0x28] sm:$0xff]  ;;  %v412_v8 = vpack.c.bf16 %v40_v6, %v32_v5  ;;  %v414_v13 = vpack.c.bf16 %v39_v11, %v31_v10  ;;  %v35_v14 = vld [vmem:[#allocation2 + $0x20] sm:$0xff]  ;;  %v42_v31 = vld [vmem:[#allocation2 + $0x58] sm:$0xff]  ;;  %s402_s4 = sshll.u32 %s509_s30, 4  ;;  %s403_s4 = int_to_ptr.vmem [resolvable:$true] %s402_s4 }
  0x16   :  { %v75_v3 = vunpack.c.0.s8 %v74_v1  ;;  %v44_v9 = vld [vmem:[#allocation2 + $0x68] sm:$0xff]  ;;  %v43_v15 = vld [vmem:[#allocation2 + $0x60] sm:$0xff]  ;;  %v38_v34 = vld [vmem:[#allocation2 + $0x38] sm:$0xff]  ;;  %v420_v39 = vpack.c.bf16 %v42_v31, %v34_v30  ;;  %s479_s5 = scalar_lea.vmem %s403_s4, 32  ;;  %p484_p9 = scmp.lt.s32.totalorder %s403_s4, %s403_s4 }
  0x17   :  { %v428_v12 = vpack.c.bf16 %v44_v9, %v36_v7  ;;  %v48_v16 = vld [vmem:[#allocation2 + $0x88] sm:$0xff]  ;;  %413 = vmatprep.subr.bf16.mxu1 %v412_v8  ;;  %v430_v18 = vpack.c.bf16 %v43_v15, %v35_v14  ;;  %v47_v24 = vld [vmem:[#allocation2 + $0x80] sm:$0xff]  ;;  %v46_v35 = vld [vmem:[#allocation2 + $0x78] sm:$0xff]  ;;  %p480_p8 = scmp.ne.s32.totalorder %s403_s4, %s479_s5  ;;  %p485_p10 = scmp.lt.s32.totalorder %s479_s5, %s479_s5 }
  0x18   :  { %v78_v17 = vsub.s32 %v75_v3, %v77_v4  ;;  %v56_v19 = vld [vmem:[#allocation2 + $0xc8] sm:$0xff]  ;;  %415 = vmatpush1.bf16.xpose.msra.mxu1 %v414_v13  ;;  %v55_v25 = vld [vmem:[#allocation2 + $0xc0] sm:$0xff]  ;;  %v436_v42 = vpack.c.bf16 %v46_v35, %v38_v34  ;;  %v33_v44 = vld [vmem:[#allocation2 + $0x10] sm:$0xff] }
  0x19   :  { %v52_v20 = vld [vmem:[#allocation2 + $0xa8] sm:$0xff]  ;;  %429 = vmatprep.subr.bf16.mxu0 %v428_v12  ;;  %v416_v22 = vpack.c.bf16 %v56_v19, %v48_v16  ;;  %v51_v26 = vld [vmem:[#allocation2 + $0xa0] sm:$0xff]  ;;  %v418_v36 = vpack.c.bf16 %v55_v25, %v47_v24  ;;  %v41_v45 = vld [vmem:[#allocation2 + $0x50] sm:$0xff]  ;;  %p486_p11 = por %p485_p10, %p484_p9 }
  0x1a   :  { %v60_v21 = vld [vmem:[#allocation2 + $0xe8] sm:$0xff]  ;;  %431 = vmatpush1.bf16.xpose.msra.mxu0 %v430_v18  ;;  %v59_v27 = vld [vmem:[#allocation2 + $0xe0] sm:$0xff]  ;;  %v37_v46 = vld [vmem:[#allocation2 + $0x30] sm:$0xff]  ;;  %v422_v54 = vpack.c.bf16 %v41_v45, %v33_v44 }
  0x1b   :  { %v432_v23 = vpack.c.bf16 %v60_v21, %v52_v20  ;;  %v29_v28 = vld [vmem:[%s563_s0] sm:$0xff]  ;;  %417 = vmatprep.subr.bf16.mxu1 %v416_v22  ;;  %v30_v32 = vld [vmem:[%s563_s0 + $0x8] sm:$0xff]  ;;  %v434_v38 = vpack.c.bf16 %v59_v27, %v51_v26  ;;  %v45_v47 = vld [vmem:[#allocation2 + $0x70] sm:$0xff]  ;;  %p487_p12 = pnand %p486_p11, %p480_p8 }
  0x1c   :  { %v79_v29 = vrot.slane %v29_v28, %v78_v17  ;;  %v96_v33 = vrot.slane %v30_v32, %v78_v17  ;;  %v72_v41 = vcombine.high %v29_v28, %v29_v28  ;;  %v89_v43 = vcombine.high %v30_v32, %v30_v32  ;;  %v50_v48 = vld [vmem:[#allocation2 + $0x98] sm:$0xff]  ;;  %v49_v60 = vld [vmem:[#allocation2 + $0x90] sm:$0xff]  ;;  %v411_v2 = vld [vmem:[%s565_s2] ss:$0 sm:$0xff] }
  0x1d   :  { %433 = vmatprep.subr.bf16.mxu0 %v432_v23  ;;  %v58_v49 = vld [vmem:[#allocation2 + $0xd8] sm:$0xff]  ;;  %v438_v55 = vpack.c.bf16 %v45_v47, %v37_v46  ;;  %v57_v61 = vld [vmem:[#allocation2 + $0xd0] sm:$0xff] }
  0x1e   :  { %v87_v37 = vcombine.high %v79_v29, %v79_v29  ;;  %v104_v40 = vcombine.high %v96_v33, %v96_v33  ;;  %v86_v50 = vrot.slane %v72_v41, %v78_v17  ;;  %v54_v51 = vld [vmem:[#allocation2 + $0xb8] sm:$0xff]  ;;  %v103_v53 = vrot.slane %v89_v43, %v78_v17  ;;  %v53_v62 = vld [vmem:[#allocation2 + $0xb0] sm:$0xff] }
  0x1f   :  { %v62_v52 = vld [vmem:[#allocation2 + $0xf8] sm:$0xff]  ;;  %v424_v56 = vpack.c.bf16 %v58_v49, %v50_v48  ;;  %v61_v63 = vld [vmem:[#allocation2 + $0xf0] sm:$0xff]  ;;  %v426_v0 = vpack.c.bf16 %v57_v61, %v49_v60 }
  0x20   :  { %178 = vmatprep.mubr.f32.mxu1 %v87_v37  ;;  %318 = vmatprep.mubr.f32.mxu0 %v104_v40  ;;  %v440_v57 = vpack.c.bf16 %v62_v52, %v54_v51  ;;  %v88_v58 = vcombine.high %v86_v50, %v86_v50  ;;  %v105_v59 = vcombine.high %v103_v53, %v103_v53 }
  0x21   :  { %419 = vmatpush1.bf16.xpose.msra.mxu1 %v418_v36  ;;  %v442_v1 = vpack.c.bf16 %v61_v63, %v53_v62 }
  0x22   :  { %435 = vmatpush1.bf16.xpose.msra.mxu0 %v434_v38  ;;  %421 = vmatprep.subr.bf16.mxu1 %v420_v39 }
  0x23   :  { %437 = vmatprep.subr.bf16.mxu0 %v436_v42 }
  0x28   :  { %179 = vmatmul.mubr.f32.vlgmr.msra.gmra.mrb[0].mxu1 %v79_v29 }
  0x29   :  { %423 = vmatpush1.bf16.xpose.msra.mxu1 %v422_v54  ;;  %319 = vmatmul.mubr.f32.vlgmr.msra.gmra.mrb[0].mxu0 %v96_v33 }
  0x2a   :  { %439 = vmatpush1.bf16.xpose.msra.mxu0 %v438_v55  ;;  %425 = vmatprep.subr.bf16.mxu1 %v424_v56 }
  0x2b   :  { %441 = vmatprep.subr.bf16.mxu0 %v440_v57  ;;  %248 = vmatprep.mubr.f32.mxu1 %v88_v58 }
  0x2c   :  { %388 = vmatprep.mubr.f32.mxu0 %v105_v59 }
  0x31   :  { %427 = vmatpush1.bf16.xpose.msra.mxu1 %v426_v0 }
  0x32   :  { %443 = vmatpush1.bf16.xpose.msra.mxu0 %v442_v1 }
  0x38   :  { %249 = vmatmul.mubr.f32.vlgmr.msra.gmra.mrb[0].mxu1 %v86_v50 }
  0x39   :  { %389 = vmatmul.mubr.f32.vlgmr.msra.gmra.mrb[0].mxu0 %v103_v53 }
 0x10b   :  { %v250_v3 = vpop.f32.mrb[0].mxu1 }
 0x10c   :  { %v444_v4 = vadd.f32 %v411_v2, %v250_v3  ;;  %v390_v5 = vpop.f32.mrb[0].mxu0  ;;  %v252_v6 = vpop.f32.mrb[1].mxu1 }
 0x10d   :  { %v392_v7 = vpop.f32.mrb[1].mxu0 }
 0x10e   :  { %v445_v8 = vadd.f32 %v444_v4, %v390_v5 }
 0x110   :  { %395 = vst.msk [vmem:[#allocation5] sm:$0x3] %vm394_vm0, %v445_v8 }
 0x111   :  { %490 = shalt.err (!%p487_p12)
}
 0x112   :  { %s491_s7 = scalar_lea.hbm %s566_s3, 32 }
 0x113   :  { %p492_p13 = scmp.ne.s32.totalorder %s566_s3, %s491_s7  ;;  %p495_p0 = scmp.lt.u32.totalorder %s491_s7, %s566_s3 }
 0x115   :  { %p497_p1 = pnand %p495_p0, %p492_p13 }
 0x117   :  { %500 = shalt.err (!%p497_p1)
}
 0x118   :  { %405 = dma.vmem_to_hbm [thread:$0]  %s403_s4, 32, %s566_s3, [#allocation4]  }
 0x119   :  { %503 = dma.done.wait [#allocation4], 32  }
 0x11a   :  { %504 = vsyncadd [#allocation4], 4294967264 }
 0x11b   :  { %409 = vsyncpa [#allocation3], 1 }
 0x11c   :  { %410 = vsyncpa [#allocation4], 1 }

</bundles_post_ra>
